<compile_context>
chip_gen: v7x
topology: tpu7x:2x2x1
jax: 0.10.0
libtpu: 0.0.40
codegen_flags: <defaults>
</compile_context>

<pallas_src>
import functools

import jax
import jax.numpy as jnp
from jax.experimental import pallas as pl
from jax.experimental.pallas import tpu as pltpu

B = 8                 # demo batch
C_IN = 4              # input channels
H = W = 16            # spatial
D = C_IN * H * W      # flattened feature dim = 1024
NUM_CLASSES = 10
C_SUB = 16            # classes padded to a sublane multiple (rows of W_T)
C_PAD = 128           # output slab lanes (one full lane tile)
LSE_LANE = NUM_CLASSES          # output lane holding logsumexp
GATHER_LANE = NUM_CLASSES + 1   # output lane holding the gathered logit

# The packed lse/gather lanes must not clobber a real logit and must fit.
assert NUM_CLASSES + 2 <= C_SUB <= C_PAD

_NEG_BIG = -1e30      # finite "-inf" (avoids inf-inf NaNs in padded lanes)


# ----------------------------------------------------------------------------
# Kernel (fused: logits + logsumexp + gather in one pass)
# ----------------------------------------------------------------------------
def _energy_fused_kernel(x_ref, wt_ref, b_ref, y_ref, out_ref):
    """out[:, :NUM_CLASSES] = logits
       out[:, LSE_LANE]     = logsumexp(logits, axis=1)
       out[:, GATHER_LANE]  = logits[i, y[i]]
       remaining lanes      = 0
    """
    x = x_ref[...]                                    # (TB, D)     f32
    wt = wt_ref[...]                                  # (C_SUB, D)  f32
    # trans_b contraction on the MXU: (TB, D) x (C_SUB, D)^T -> (TB, C_SUB)
    logits = jax.lax.dot_general(
        x, wt, (((1,), (1,)), ((), ())),
        preferred_element_type=jnp.float32) + b_ref[...]          # (TB, C_SUB)

    col = jax.lax.broadcasted_iota(jnp.int32, logits.shape, 1)
    valid = col < NUM_CLASSES

    # Stable logsumexp over the *real* classes only (exp/log go to the EUP).
    masked = jnp.where(valid, logits, _NEG_BIG)
    m = jnp.max(masked, axis=-1, keepdims=True)                   # (TB, 1)
    lse = m + jnp.log(jnp.sum(jnp.exp(masked - m), axis=-1, keepdims=True))

    # torch.gather(logits, 1, y[:, None]) via a one-hot mask (~one vreg of VPU).
    # NOTE: y outside [0, NUM_CLASSES) selects nothing and yields 0.0 instead
    # of failing like torch.gather; callers must pass valid labels.
    sel = (col == y_ref[...]) & valid                             # y: (TB, 1)
    gathered = jnp.sum(jnp.where(sel, logits, 0.0), axis=-1, keepdims=True)

    packed = jnp.where(valid, logits, 0.0)
    packed = jnp.where(col == LSE_LANE, lse, packed)
    packed = jnp.where(col == GATHER_LANE, gathered, packed)

    out_ref[...] = jnp.zeros_like(out_ref)            # keep padded lanes defined
    out_ref[:, :C_SUB] = packed                       # one-vreg masked store


# ----------------------------------------------------------------------------
# pallas_call wrappers
# ----------------------------------------------------------------------------
_VMEM_SPEC = pl.BlockSpec(memory_space=pltpu.MemorySpace.VMEM)


def _cost(batch, feat):
    return pl.CostEstimate(
        flops=2 * batch * feat * C_SUB,
        transcendentals=batch * (C_SUB + 1),
        bytes_accessed=4 * (batch * feat + C_SUB * feat + C_SUB
                            + batch + batch * C_PAD),
    )


def pad_params(w, b):
    """One-time repack: W (D, NUM_CLASSES) -> W_T (C_SUB, D) lane-dense f32,
    b (1, NUM_CLASSES) -> (1, C_SUB).  Padded classes are zero."""
    d = w.shape[0]
    wt_pad = jnp.zeros((C_SUB, d), jnp.float32).at[:NUM_CLASSES, :].set(
        w.astype(jnp.float32).T)
    b_pad = jnp.zeros((1, C_SUB), jnp.float32).at[:, :NUM_CLASSES].set(
        b.reshape(1, -1).astype(jnp.float32))
    return wt_pad, b_pad


@functools.partial(jax.jit, static_argnames=("tb",))
def _forward_impl(x, wt_pad, b_pad, y_col, tb):
    batch = x.shape[0]
    feat = x.shape[1] * x.shape[2] * x.shape[3]
    x_flat = x.astype(jnp.float32).reshape(batch, feat)   # bitcast for f32 NCHW

    if tb is None:
        # Whole problem lives in VMEM; no grid (nothing worth pipelining, a
        # 1-point grid would only add the ~0.35us per-step overhead).
        return pl.pallas_call(
            _energy_fused_kernel,
            out_shape=jax.ShapeDtypeStruct((batch, C_PAD), jnp.float32),
            in_specs=[_VMEM_SPEC, _VMEM_SPEC, _VMEM_SPEC, _VMEM_SPEC],
            out_specs=_VMEM_SPEC,
            cost_estimate=_cost(batch, feat),
        )(x_flat, wt_pad, b_pad, y_col)

    # Large batch: tile the batch dim; "parallel" lets megacore / v7x's two
    # TensorCores split the grid.  W_T / b block index is constant across the
    # grid, so they are fetched once and stay resident.
    return pl.pallas_call(
        _energy_fused_kernel,
        out_shape=jax.ShapeDtypeStruct((batch, C_PAD), jnp.float32),
        grid=(batch // tb,),
        in_specs=[
            pl.BlockSpec((tb, feat), lambda i: (i, 0)),
            pl.BlockSpec((C_SUB, feat), lambda i: (0, 0)),
            pl.BlockSpec((1, C_SUB), lambda i: (0, 0)),
            pl.BlockSpec((tb, 1), lambda i: (i, 0)),
        ],
        out_specs=pl.BlockSpec((tb, C_PAD), lambda i: (i, 0)),
        compiler_params=pltpu.CompilerParams(
            dimension_semantics=("parallel",)),
        cost_estimate=_cost(batch, feat),
    )(x_flat, wt_pad, b_pad, y_col)


def _pick_tile(batch):
    # No grid for small batches; 128-row tiles once the batch is large enough
    # to amortize per-step overhead (and to let v7x's two TCs share the work).
    # Per-block VMEM at tb=128 is ~0.6 MiB: fine on v5e/v6e (128 MiB) and on
    # v7x's smaller 64 MiB VMEM.
    if batch >= 256 and batch % 128 == 0:
        return 128
    return None


def energy_model_forward(x, wt_pad, b_pad, y=None):
    """Mirrors EnergyModel.forward.  x: [B, C, H, W]; params pre-padded."""
    batch = x.shape[0]
    y_col = (jnp.zeros((batch, 1), jnp.int32) if y is None
             else y.astype(jnp.int32).reshape(batch, 1))
    out = _forward_impl(x, wt_pad, b_pad, y_col, _pick_tile(batch))
    logits = out[:, :NUM_CLASSES]
    if y is None:
        return out[:, LSE_LANE], logits                    # (k, logits), k: (B,)
    return out[:, GATHER_LANE:GATHER_LANE + 1], logits     # ((B, 1), logits)


def energy_model_forward_both(x, wt_pad, b_pad, y):
    """Both branches from a single fused pallas_call: (lse, gathered, logits)."""
    batch = x.shape[0]
    y_col = y.astype(jnp.int32).reshape(batch, 1)
    out = _forward_impl(x, wt_pad, b_pad, y_col, _pick_tile(batch))
    return (out[:, LSE_LANE], out[:, GATHER_LANE:GATHER_LANE + 1],
            out[:, :NUM_CLASSES])


# ----------------------------------------------------------------------------
# Main
# ----------------------------------------------------------------------------
if __name__ == "__main__":
    key = jax.random.PRNGKey(0)
    kx, kw, kb, ky, kx2, ky2 = jax.random.split(key, 6)

    w_param = jax.random.normal(kw, (D, NUM_CLASSES), dtype=jnp.float32) * 0.02
    b_param = jax.random.normal(kb, (1, NUM_CLASSES), dtype=jnp.float32) * 0.02
    wt_pad, b_pad = pad_params(w_param, b_param)
    jax.block_until_ready((wt_pad, b_pad))

    def reference(x, y):
        x_flat = x.reshape(x.shape[0], -1)
        logits = x_flat @ w_param + b_param
        k = jax.scipy.special.logsumexp(logits, axis=1)
        g = jnp.take_along_axis(logits, y[:, None], axis=1)
        return k, g, logits

    # ---- small batch (B=8): no-grid path, both forward branches -------------
    x = jax.random.normal(kx, (B, C_IN, H, W), dtype=jnp.float32)
    y = jax.random.randint(ky, (B,), 0, NUM_CLASSES, dtype=jnp.int32)

    k_out, logits_out = energy_model_forward(x, wt_pad, b_pad, y=None)
    g_out, logits_out2 = energy_model_forward(x, wt_pad, b_pad, y=y)
    jax.block_until_ready((k_out, logits_out, g_out, logits_out2))

    k_ref, g_ref, logits_ref = reference(x, y)
    assert jnp.allclose(logits_out, logits_ref, atol=1e-4, rtol=1e-4)
    assert jnp.allclose(logits_out2, logits_ref, atol=1e-4, rtol=1e-4)
    assert jnp.allclose(k_out, k_ref, atol=1e-4, rtol=1e-4)
    assert jnp.allclose(g_out, g_ref, atol=1e-4, rtol=1e-4)
    assert k_out.shape == (B,) and g_out.shape == (B, 1)

    # ---- large batch (B=256): batch-parallel grid, fused both-branch call ---
    B_BIG = 256
    x_big = jax.random.normal(kx2, (B_BIG, C_IN, H, W), dtype=jnp.float32)
    y_big = jax.random.randint(ky2, (B_BIG,), 0, NUM_CLASSES, dtype=jnp.int32)

    k_big, g_big, logits_big = energy_model_forward_both(x_big, wt_pad, b_pad,
                                                         y_big)
    jax.block_until_ready((k_big, g_big, logits_big))

    k_bref, g_bref, logits_bref = reference(x_big, y_big)
    assert jnp.allclose(logits_big, logits_bref, atol=1e-4, rtol=1e-4)
    assert jnp.allclose(k_big, k_bref, atol=1e-4, rtol=1e-4)
    assert jnp.allclose(g_big, g_bref, atol=1e-4, rtol=1e-4)

    print("KERNEL_OK")
</pallas_src>

<mosaic_0001>
module attributes {stable_mosaic.version = 11 : i64} {
  func.func @_energy_fused_kernel(%arg0: memref<8x1024xf32, #tpu.memory_space<vmem>>, %arg1: memref<16x1024xf32, #tpu.memory_space<vmem>>, %arg2: memref<1x16xf32, #tpu.memory_space<vmem>>, %arg3: memref<8x1xi32, #tpu.memory_space<vmem>>, %arg4: memref<8x128xf32, #tpu.memory_space<vmem>>) attributes {dimension_semantics = [], scalar_prefetch = 0 : i64, scratch_operands = 0 : i64, tpu.core_type = #tpu.core_type<tc>} {
    %c0 = arith.constant 0 : index
    %c0_0 = arith.constant 0 : index
    %0 = vector.load %arg0[%c0, %c0_0] : memref<8x1024xf32, #tpu.memory_space<vmem>>, vector<8x1024xf32>
    %c0_1 = arith.constant 0 : index
    %c0_2 = arith.constant 0 : index
    %1 = vector.load %arg1[%c0_1, %c0_2] : memref<16x1024xf32, #tpu.memory_space<vmem>>, vector<16x1024xf32>
    %cst = arith.constant dense<0.000000e+00> : vector<8x16xf32>
    %2 = tpu.matmul %0, %1, %cst {dimension_numbers = #tpu.dot_dimension_numbers<[1], [1], [0], [0], [0, 0, 1, 0], [], []>} : vector<8x1024xf32>, vector<16x1024xf32>, vector<8x16xf32> -> vector<8x16xf32>
    %c0_3 = arith.constant 0 : index
    %c0_4 = arith.constant 0 : index
    %3 = vector.load %arg2[%c0_3, %c0_4] : memref<1x16xf32, #tpu.memory_space<vmem>>, vector<1x16xf32>
    %4 = vector.broadcast %3 : vector<1x16xf32> to vector<8x16xf32>
    %5 = arith.addf %2, %4 : vector<8x16xf32>
    %6 = tpu.iota {dimensions = array<i32: 1>} : vector<8x16xi32>
    %c10_i32 = arith.constant 10 : i32
    %7 = vector.broadcast %c10_i32 : i32 to vector<8x16xi32>
    %8 = arith.cmpi slt, %6, %7 : vector<8x16xi32>
    %cst_5 = arith.constant -1.000000e+30 : f32
    %9 = vector.broadcast %cst_5 : f32 to vector<8x16xf32>
    %10 = arith.select %8, %5, %9 : vector<8x16xi1>, vector<8x16xf32>
    %cst_6 = arith.constant dense<0xFF800000> : vector<8xf32>
    %11 = vector.multi_reduction <maximumf>, %10, %cst_6 [1] : vector<8x16xf32> to vector<8xf32>
    %12 = vector.shape_cast %11 : vector<8xf32> to vector<8x1xf32>
    %13 = vector.broadcast %12 : vector<8x1xf32> to vector<8x16xf32>
    %14 = arith.subf %10, %13 : vector<8x16xf32>
    %15 = math.exp %14 : vector<8x16xf32>
    %cst_7 = arith.constant dense<0.000000e+00> : vector<8xf32>
    %16 = vector.multi_reduction <add>, %15, %cst_7 [1] : vector<8x16xf32> to vector<8xf32>
    %17 = vector.shape_cast %16 : vector<8xf32> to vector<8x1xf32>
    %18 = math.log %17 : vector<8x1xf32>
    %19 = arith.addf %12, %18 : vector<8x1xf32>
    %c0_8 = arith.constant 0 : index
    %c0_9 = arith.constant 0 : index
    %20 = vector.load %arg3[%c0_8, %c0_9] : memref<8x1xi32, #tpu.memory_space<vmem>>, vector<8x1xi32>
    %21 = vector.broadcast %20 : vector<8x1xi32> to vector<8x16xi32>
    %22 = arith.cmpi eq, %6, %21 : vector<8x16xi32>
    %23 = arith.andi %22, %8 : vector<8x16xi1>
    %cst_10 = arith.constant 0.000000e+00 : f32
    %24 = vector.broadcast %cst_10 : f32 to vector<8x16xf32>
    %25 = arith.select %23, %5, %24 : vector<8x16xi1>, vector<8x16xf32>
    %cst_11 = arith.constant dense<0.000000e+00> : vector<8xf32>
    %26 = vector.multi_reduction <add>, %25, %cst_11 [1] : vector<8x16xf32> to vector<8xf32>
    %27 = vector.shape_cast %26 : vector<8xf32> to vector<8x1xf32>
    %cst_12 = arith.constant 0.000000e+00 : f32
    %28 = vector.broadcast %cst_12 : f32 to vector<8x16xf32>
    %29 = arith.select %8, %5, %28 : vector<8x16xi1>, vector<8x16xf32>
    %c10_i32_13 = arith.constant 10 : i32
    %30 = vector.broadcast %c10_i32_13 : i32 to vector<8x16xi32>
    %31 = arith.cmpi eq, %6, %30 : vector<8x16xi32>
    %32 = vector.shape_cast %19 : vector<8x1xf32> to vector<8x1xf32>
    %33 = vector.broadcast %32 : vector<8x1xf32> to vector<8x16xf32>
    %34 = arith.select %31, %33, %29 : vector<8x16xi1>, vector<8x16xf32>
    %c11_i32 = arith.constant 11 : i32
    %35 = vector.broadcast %c11_i32 : i32 to vector<8x16xi32>
    %36 = arith.cmpi eq, %6, %35 : vector<8x16xi32>
    %37 = vector.shape_cast %27 : vector<8x1xf32> to vector<8x1xf32>
    %38 = vector.broadcast %37 : vector<8x1xf32> to vector<8x16xf32>
    %39 = arith.select %36, %38, %34 : vector<8x16xi1>, vector<8x16xf32>
    %cst_14 = arith.constant 0.000000e+00 : f32
    %40 = vector.broadcast %cst_14 : f32 to vector<8x128xf32>
    %c0_15 = arith.constant 0 : index
    %c0_16 = arith.constant 0 : index
    %41 = vector.load %arg4[%c0_15, %c0_16] : memref<8x128xf32, #tpu.memory_space<vmem>>, vector<8x128xf32>
    tpu.vector_store %arg4[%c0_15, %c0_16], %40 {strides = array<i32>} : memref<8x128xf32, #tpu.memory_space<vmem>>, vector<8x128xf32>,
    %c0_17 = arith.constant 0 : index
    %c0_18 = arith.constant 0 : index
    %42 = vector.load %arg4[%c0_17, %c0_18] : memref<8x128xf32, #tpu.memory_space<vmem>>, vector<8x16xf32>
    tpu.vector_store %arg4[%c0_17, %c0_18], %39 {strides = array<i32>} : memref<8x128xf32, #tpu.memory_space<vmem>>, vector<8x16xf32>,
    return
  }
}

</mosaic_0001>

<bundles_post_ra>
// kernel: _forward_impl.1
= control target key start
LH: loop header
LB: loop body
LE: loop exit
PB: predicated region body
PF: predicated region fallthrough
CT: control target
= control target key end

     0   :  { %s557_s0 = inlined_call_operand.vmem [shape: f32[8,1024], index: 0, kind: input, shape index: {}]   ;;  %s558_s1 = inlined_call_operand.vmem [shape: f32[16,1024], index: 1, kind: input, shape index: {}]   ;;  %s559_s2 = inlined_call_operand.vmem [shape: f32[1,16], index: 2, kind: input, shape index: {}]   ;;  %s560_s3 = inlined_call_operand.vmem [shape: s32[8,1], index: 3, kind: input, shape index: {}]   ;;  %s561_s4 = inlined_call_operand.hbm [shape: f32[8,128], index: 4, kind: output, shape index: {}]  }
   0x1   :  { %v27_v0 = vld [vmem:[%s558_s1 + $0x8] sm:$0xff]  ;;  %v26_v5 = vld [vmem:[%s558_s1] sm:$0xff]  ;;  %v29_v14 = vld [vmem:[%s558_s1 + $0x18] sm:$0xff] }
   0x2   :  { %v35_v1 = vld [vmem:[%s558_s1 + $0x48] sm:$0xff]  ;;  %v34_v6 = vld [vmem:[%s558_s1 + $0x40] sm:$0xff]  ;;  %v37_v15 = vld [vmem:[%s558_s1 + $0x58] sm:$0xff] }
   0x3   :  { %v31_v2 = vld [vmem:[%s558_s1 + $0x28] sm:$0xff]  ;;  %v378_v3 = vpack.c.bf16 %v35_v1, %v27_v0  ;;  %v380_v8 = vpack.c.bf16 %v34_v6, %v26_v5  ;;  %v30_v9 = vld [vmem:[%s558_s1 + $0x20] sm:$0xff]  ;;  %v33_v16 = vld [vmem:[%s558_s1 + $0x38] sm:$0xff]  ;;  %v382_v17 = vpack.c.bf16 %v37_v15, %v29_v14 }
   0x4   :  { %v39_v4 = vld [vmem:[%s558_s1 + $0x68] sm:$0xff]  ;;  %v38_v10 = vld [vmem:[%s558_s1 + $0x60] sm:$0xff]  ;;  %v41_v18 = vld [vmem:[%s558_s1 + $0x78] sm:$0xff] }
   0x5   :  { %v386_v7 = vpack.c.bf16 %v39_v4, %v31_v2  ;;  %v19_v11 = vld [vmem:[%s557_s0 + $0x8] sm:$0xff]  ;;  %379 = vmatprep.subr.bf16.mxu1 %v378_v3  ;;  %v388_v12 = vpack.c.bf16 %v38_v10, %v30_v9  ;;  %v28_v19 = vld [vmem:[%s558_s1 + $0x10] sm:$0xff]  ;;  %v390_v21 = vpack.c.bf16 %v41_v18, %v33_v16  ;;  %v18_v24 = vld [vmem:[%s557_s0] sm:$0xff] }
   0x6   :  { %113 = vmatprep.mubr.f32.mxu1 %v19_v11  ;;  %v23_v13 = vld [vmem:[%s557_s0 + $0x28] sm:$0xff]  ;;  %381 = vmatpush1.bf16.xpose.msra.mxu1 %v380_v8  ;;  %v36_v20 = vld [vmem:[%s558_s1 + $0x50] sm:$0xff] }
   0x7   :  { %387 = vmatprep.subr.bf16.mxu0 %v386_v7  ;;  %253 = vmatprep.mubr.f32.mxu0 %v23_v13  ;;  %v32_v22 = vld [vmem:[%s558_s1 + $0x30] sm:$0xff]  ;;  %v384_v25 = vpack.c.bf16 %v36_v20, %v28_v19 }
   0x8   :  { %389 = vmatpush1.bf16.xpose.msra.mxu0 %v388_v12  ;;  %v40_v23 = vld [vmem:[%s558_s1 + $0x70] sm:$0xff]  ;;  %383 = vmatprep.subr.bf16.mxu1 %v382_v17 }
   0x9   :  { %391 = vmatprep.subr.bf16.mxu0 %v390_v21 }
   0xa   :  { %9 = vsyncpa [#allocation3], 0  ;;  %v22_v26 = vld [vmem:[%s557_s0 + $0x20] sm:$0xff]  ;;  %v392_v27 = vpack.c.bf16 %v40_v23, %v32_v22  ;;  %v21_v28 = vld [vmem:[%s557_s0 + $0x18] sm:$0xff]  ;;  %v432_v32 = vmov 0   ;;  %v329_v33 = vlaneseq  ;;  %vm333_vm1 = vcmask 130048  }
   0xb   :  { %v25_v29 = vld [vmem:[%s557_s0 + $0x38] sm:$0xff]  ;;  %v20_v30 = vld [vmem:[%s557_s0 + $0x10] sm:$0xff]  ;;  %403 = vset.pattern.permute.xlu0 %v432_v32  ;;  %v377_v34 = vld [vmem:[%s559_s2] ss:$0 sm:$0xff]  ;;  %v433_v53 = vmov 0.0   ;;  %s434_s2 = smov [#allocation2]  }
   0xc   :  { %v24_v31 = vld [vmem:[%s557_s0 + $0x30] sm:$0xff]  ;;  %v330_v35 = vand.u32 127, %v329_v33  ;;  %v346_v44 = vld [vmem:[%s560_s3] sm:$0xff]  ;;  %361 = vst [vmem:[#allocation2] sm:$0xff] %v433_v53  ;;  %s369_s3 = sshll.u32 %s434_s2, 4  ;;  %s370_s3 = int_to_ptr.vmem [resolvable:$true] %s369_s3 }
   0xd   :  { %114 = vmatmul.mubr.f32.vlgmr.msra.gmra.mrb[0].mxu1 %v18_v24  ;;  %s408_s13 = scalar_lea.vmem %s370_s3, 128  ;;  %p413_p1 = scmp.lt.s32.totalorder %s370_s3, %s370_s3 }
   0xe   :  { %385 = vmatpush1.bf16.xpose.msra.mxu1 %v384_v25  ;;  %183 = vmatprep.mubr.f32.mxu1 %v21_v28  ;;  %vm331_vm0 = vcmp.lt.s32.totalorder %v330_v35, 10  ;;  %vm357_vm4 = vcmp.eq.s32.totalorder %v330_v35, 10  ;;  %vm359_vm5 = vcmp.eq.s32.totalorder %v330_v35, 11  ;;  %p409_p0 = scmp.ne.s32.totalorder %s370_s3, %s408_s13  ;;  %p414_p2 = scmp.lt.s32.totalorder %s408_s13, %s408_s13 }
   0xf   :  { %254 = vmatmul.mubr.f32.vlgmr.msra.gmra.mrb[0].mxu0 %v22_v26 }
  0x10   :  { %393 = vmatpush1.bf16.xpose.msra.mxu0 %v392_v27  ;;  %323 = vmatprep.mubr.f32.mxu0 %v25_v29  ;;  %p415_p3 = por %p414_p2, %p413_p1 }
  0x12   :  { %p416_p4 = pnand %p415_p3, %p409_p0 }
  0x15   :  { %184 = vmatmul.mubr.f32.vlgmr.msra.gmra.mrb[0].mxu1 %v20_v30 }
  0x17   :  { %324 = vmatmul.mubr.f32.vlgmr.msra.gmra.mrb[0].mxu0 %v24_v31 }
  0xe8   :  { %v185_v36 = vpop.f32.mrb[0].mxu1 }
  0xe9   :  { %v394_v37 = vadd.f32 %v377_v34, %v185_v36  ;;  %v187_v39 = vpop.f32.mrb[1].mxu1 }
  0xea   :  { %v325_v38 = vpop.f32.mrb[0].mxu0 }
  0xeb   :  { %v327_v40 = vpop.f32.mrb[1].mxu0  ;;  %v395_v41 = vadd.f32 %v394_v37, %v325_v38 }
  0xed   :  { %v332_v42 = vsel %vm331_vm0, %v395_v41, -1e+30  ;;  %v356_v58 = vsel %vm331_vm0, %v395_v41, 0.0 }
  0xee   :  { %v334_v43 = vsel %vm333_vm1, %v332_v42, -inf }
  0xef   :  { %335 = vmax.xlane.f32.xlu0 %v334_v43 }
 0x105   :  { %348 = vperm.xlu0 %403, %v346_v44  }
 0x17c   :  { %v336_v45 = vpop.xlane.xlu0 %335 }
 0x17d   :  { %v337_v46 = vsub.f32 %v332_v42, %v336_v45 }
 0x17f   :  { %v338_v47 = vmul.f32 1.442695, %v337_v46 }
 0x181   :  { %404 = vpow2.f32 %v338_v47 }
 0x184   :  { %v349_v48 = vpop.permute.xlu0 %348 }
 0x185   :  { %vm350_vm2 = vcmp.eq.s32.totalorder %v330_v35, %v349_v48 }
 0x186   :  { %vm351_vm3 = vmand %vm350_vm2, %vm331_vm0 }
 0x187   :  { %v352_v51 = vsel %vm351_vm3, %v395_v41, 0.0 }
 0x188   :  { %v353_v52 = vsel %vm333_vm1, %v352_v51, 0.0 }
 0x18b   :  { %v405_v49 = vpop.eup %404 }
 0x18c   :  { %v340_v50 = vsel %vm333_vm1, %v405_v49, 0.0 }
 0x18d   :  { %341 = vadd.xlane.f32.xlu1 %v340_v50 }
 0x191   :  { %354 = vadd.xlane.f32.xlu1 %v353_v52 }
 0x21a   :  { %v342_v54 = vpop.xlane.xlu1 %341 }
 0x21b   :  { %406 = vlog2.f32 %v342_v54 }
 0x21e   :  { %v355_v60 = vpop.xlane.xlu1 %354 }
 0x225   :  { %v407_v55 = vpop.eup %406 }
 0x226   :  { %v344_v56 = vmul.f32 0.6931472, %v407_v55 }
 0x228   :  { %v345_v57 = vadd.f32 %v344_v56, %v336_v45 }
 0x22a   :  { %v358_v59 = vsel %vm357_vm4, %v345_v57, %v356_v58 }
 0x22b   :  { %v360_v61 = vsel %vm359_vm5, %v355_v60, %v358_v59 }
 0x22c   :  { %362 = vst.msk [vmem:[#allocation2] sm:$0xff] %vm333_vm1, %v360_v61 }
 0x22d   :  { %419 = shalt.err (!%p416_p4)
}
 0x22e   :  { %s420_s16 = scalar_lea.hbm %s561_s4, 128 }
 0x22f   :  { %p421_p5 = scmp.ne.s32.totalorder %s561_s4, %s420_s16  ;;  %p424_p6 = scmp.lt.u32.totalorder %s420_s16, %s561_s4 }
 0x231   :  { %p426_p7 = pnand %p424_p6, %p421_p5 }
 0x233   :  { %429 = shalt.err (!%p426_p7)
}
 0x234   :  { %372 = dma.vmem_to_hbm [thread:$0]  %s370_s3, 128, %s561_s4, [#allocation3]  }
 0x235   :  { %430 = dma.done.wait [#allocation3], 128  }
 0x236   :  { %431 = vsyncadd [#allocation3], 4294967168 }
 0x237   :  { %376 = vsyncpa [#allocation3], 1 }

</bundles_post_ra>
